<compile_context>
chip_gen: v7x
topology: tpu7x:2x2x1
jax: 0.10.0
libtpu: 0.0.40
codegen_flags: <defaults>
</compile_context>

<pallas_src>
import math
import functools

import jax
import jax.numpy as jnp
from jax.experimental import pallas as pl
from jax.experimental.pallas import tpu as pltpu

MIN_NORM = 1e-15
# f32-safe artanh clamp: 1 - 1e-15 rounds to exactly 1.0 in float32.
ARTANH_EPS = 1e-7


def _artanh(z):
    z = jnp.clip(z, -1.0 + ARTANH_EPS, 1.0 - ARTANH_EPS)
    return 0.5 * (jnp.log(1.0 + z) - jnp.log(1.0 - z))


def _round_up(v, m):
    return ((v + m - 1) // m) * m


def _tpu_vmem_info():
    """(physical VMEM bytes per core, is_small_vmem_part)."""
    vmem_cap = 64 << 20  # conservative fallback = v7x per-TC VMEM
    try:
        info = pltpu.get_tpu_info()
        cap = getattr(info, "vmem_capacity_bytes", None)
        if cap:
            vmem_cap = int(cap)
    except Exception:
        pass
    small_vmem = vmem_cap <= (80 << 20)  # v7x-like: 64 MiB/TC, 2 TCs/chip
    return vmem_cap, small_vmem


def _vmem_need(block_b, block_k, fout_p, x_itemsize, mm_itemsize, out_itemsize):
    """Working-set estimate for one grid step (double-buffered inputs/output)."""
    return (2 * block_b * block_k * x_itemsize        # x tile
            + 2 * block_k * fout_p * mm_itemsize      # weight tile
            + 2 * block_b * fout_p * out_itemsize     # output tile
            + block_b * fout_p * 4                    # mx accumulator (f32)
            + block_b * 4                             # ||x||^2 accumulator
            + 2 * fout_p * 4 + 8                      # p_bias, y2
            + (1 << 20))                              # internal-scratch slack


def _plan(Fin, Fout, mm_itemsize, *, block_b, block_k_target, vmem_budget,
          weight_resident, x_itemsize=4, out_itemsize=4):
    """Pick (block_k, fin_p, fout_p, nominal block_b)."""
    fout_p = _round_up(Fout, 128)
    fin_full = _round_up(Fin, 128)
    # Weight-resident mode: single K step; the weight block index is constant
    # across batch tiles so it is DMA'd from HBM exactly once per core.
    if weight_resident is None:
        weight_resident = (_vmem_need(block_b, fin_full, fout_p, x_itemsize,
                                      mm_itemsize, out_itemsize) <= vmem_budget)
    if weight_resident:
        return fin_full, fin_full, fout_p, block_b
    # K-tiled: pad Fin UP to a multiple of block_k (don't shrink block_k to a
    # divisor); shrink block_k, then block_b, until the working set fits.
    bk = max(128, min((int(block_k_target) // 128) * 128, fin_full))
    bb = block_b
    while _vmem_need(bb, bk, fout_p, x_itemsize, mm_itemsize,
                     out_itemsize) > vmem_budget:
        if bk > 128:
            bk = max(128, ((bk // 2) // 128) * 128)
        elif bb > 8:
            bb = max(8, _round_up(bb // 2, 8))
        else:
            break
    fin_p = _round_up(Fin, bk)
    return bk, fin_p, fout_p, bb


def poincare_linear_kernel(x_ref, w_ref, pb_ref, y2_ref, o_ref,
                           mx_acc, x2_acc, *, c, mm_dtype, approx_recip):
    k = pl.program_id(1)
    nk = pl.num_programs(1)
    sqrt_c = math.sqrt(c)

    if approx_recip:
        inv = lambda v: pl.reciprocal(v, approx=True)   # EUP slot, ~free
    else:
        inv = lambda v: 1.0 / v                         # exact (f32 path)

    @pl.when(k == 0)
    def _():
        mx_acc[...] = jnp.zeros_like(mx_acc)
        x2_acc[...] = jnp.zeros_like(x2_acc)

    x_blk = x_ref[...].astype(jnp.float32)                         # (TB, TK)
    x2_acc[...] += jnp.sum(x_blk * x_blk, axis=-1, keepdims=True)

    # Plain (M,K)x(K,N) contraction: weight is pre-transposed to (Fin, Fout)
    # and pre-cast to matmul precision in the cached prepare step.
    mx_acc[...] += jnp.dot(x_blk.astype(mm_dtype), w_ref[...],
                           preferred_element_type=jnp.float32)

    @pl.when(k == nk - 1)
    def _():
        mx = mx_acc[...]                                           # (TB, Fout)
        mx2 = jnp.sum(mx * mx, axis=-1, keepdims=True)             # (TB, 1)
        mx_norm = jnp.maximum(jnp.sqrt(mx2), MIN_NORM)
        x_norm = jnp.maximum(jnp.sqrt(x2_acc[...]), MIN_NORM)

        # mobius_matvec scaling on narrow (TB, 1) columns, then broadcast-mul.
        scale = jnp.tanh(mx_norm * inv(x_norm) * _artanh(sqrt_c * x_norm)) \
            * inv(mx_norm * sqrt_c)
        # Exact all-zero-row test (matches the reference all(mx == 0)).
        row_max = jnp.max(jnp.abs(mx), axis=-1, keepdims=True)
        scale = jnp.where(row_max == 0.0, 0.0, scale)
        res = mx * scale

        # mobius_add(res, p_bias); p_bias = expmap0(bias, c) and
        # y2 = ||p_bias||^2 are grid-invariant (precomputed in the wrapper).
        p_bias = pb_ref[...].astype(jnp.float32)                   # (1, Fout)
        y2 = y2_ref[...].astype(jnp.float32)                       # (1, 1)
        x2 = jnp.sum(res * res, axis=-1, keepdims=True)
        xy = jnp.sum(res * p_bias, axis=-1, keepdims=True)
        num = (1.0 + 2.0 * c * xy + c * y2) * res + (1.0 - c * x2) * p_bias
        denom = jnp.maximum(1.0 + 2.0 * c * xy + (c * c) * x2 * y2, MIN_NORM)
        o_ref[...] = (num * inv(denom)).astype(o_ref.dtype)


def prepare_poincare_linear(weight, bias, curvature, *, matmul_dtype=jnp.float32,
                            block_b=None, block_k=512, weight_resident=None):
    """One-time (cacheable) preparation: plan tiling, pre-transpose / pad /
    cast the weight, precompute expmap0(bias)."""
    Fout, Fin = weight.shape
    c = float(curvature)
    sqrt_c = math.sqrt(c)
    mm_dtype = jnp.dtype(matmul_dtype)

    vmem_cap, small_vmem = _tpu_vmem_info()
    vmem_budget = int(vmem_cap * 0.85)            # leave Mosaic headroom
    if block_b is None:
        block_b = 256 if small_vmem else 512      # generation-conditional
    block_b = max(8, _round_up(int(block_b), 8))

    blk_k, fin_p, fout_p, blk_b = _plan(
        Fin, Fout, mm_dtype.itemsize, block_b=block_b, block_k_target=block_k,
        vmem_budget=vmem_budget, weight_resident=weight_resident)

    # Hoisted out of the per-call hot path: transpose + pad + cast once.
    w_t = jnp.asarray(weight, jnp.float32).T                     # (Fin, Fout)
    w_pad = jnp.pad(w_t, ((0, fin_p - Fin), (0, fout_p - Fout))).astype(mm_dtype)

    # euclidean2poincare(bias, c) = expmap0 at the origin (grid-invariant).
    bf = jnp.asarray(bias, jnp.float32)
    b_norm = jnp.maximum(jnp.sqrt(jnp.sum(bf * bf)), MIN_NORM)
    p_bias = jnp.tanh(sqrt_c * b_norm) * bf / (sqrt_c * b_norm)
    p_bias = jnp.pad(p_bias, (0, fout_p - Fout)).reshape(1, fout_p)
    y2 = jnp.sum(p_bias * p_bias).reshape(1, 1)

    return dict(w=w_pad, p_bias=p_bias, y2=y2, c=c, Fin=Fin, Fout=Fout,
                fin_p=fin_p, fout_p=fout_p, block_k=blk_k, block_b=blk_b,
                mm_dtype=mm_dtype, vmem_budget=vmem_budget,
                small_vmem=small_vmem)


def poincare_linear_prepared(x, prep, *, approx_reciprocal=None):
    """x: (B, Fin); prep: output of prepare_poincare_linear."""
    B, Fin = x.shape
    assert Fin == prep["Fin"], "feature-dim mismatch with prepared weight"
    fin_p, fout_p = prep["fin_p"], prep["fout_p"]
    block_k = prep["block_k"]
    mm_dtype = prep["mm_dtype"]
    if approx_reciprocal is None:
        # approx EUP reciprocals only when matmul is already reduced precision.
        approx_reciprocal = (mm_dtype != jnp.float32)

    # Batch tiling: rebalance so padding waste stays below one sublane row per
    # tile; keep >=2 batch tiles on 2-TC (v7x-like) parts so megacore engages.
    block_b = prep["block_b"]
    n_b = max(1, -(-B // block_b))
    if prep["small_vmem"] and n_b == 1 and B > 8:
        n_b = 2
    block_b = max(8, _round_up(-(-B // n_b), 8))
    b_p = n_b * block_b

    x_pad = x
    if (b_p != B) or (fin_p != Fin):
        x_pad = jnp.pad(x, ((0, b_p - B), (0, fin_p - Fin)))

    n_k = fin_p // block_k
    grid = (n_b, n_k)

    need = _vmem_need(block_b, block_k, fout_p, x_pad.dtype.itemsize,
                      mm_dtype.itemsize, x.dtype.itemsize)
    vmem_limit = int(min(max(need, 16 << 20), prep["vmem_budget"]))

    kernel = functools.partial(poincare_linear_kernel, c=prep["c"],
                               mm_dtype=mm_dtype,
                               approx_recip=bool(approx_reciprocal))

    out = pl.pallas_call(
        kernel,
        out_shape=jax.ShapeDtypeStruct((b_p, fout_p), x.dtype),
        grid=grid,
        in_specs=[
            pl.BlockSpec((block_b, block_k), lambda i, k: (i, k)),   # x
            pl.BlockSpec((block_k, fout_p), lambda i, k: (k, 0)),    # weight
            pl.BlockSpec((1, fout_p), lambda i, k: (0, 0)),          # p_bias
            pl.BlockSpec((1, 1), lambda i, k: (0, 0)),               # ||p_bias||^2
        ],
        out_specs=pl.BlockSpec((block_b, fout_p), lambda i, k: (i, 0)),
        scratch_shapes=[
            pltpu.VMEM((block_b, fout_p), jnp.float32),   # mx accumulator
            pltpu.VMEM((block_b, 1), jnp.float32),        # ||x||^2 partial
        ],
        compiler_params=pltpu.CompilerParams(
            dimension_semantics=("parallel", "arbitrary"),
            vmem_limit_bytes=vmem_limit),
    )(x_pad, prep["w"], prep["p_bias"], prep["y2"])

    return out[:B, :prep["Fout"]]


def poincare_linear(x, weight, bias, curvature, *, matmul_dtype=jnp.float32,
                    block_b=None, block_k=512, weight_resident=None,
                    approx_reciprocal=None):
    """Convenience one-shot wrapper (prepare + run). For repeated calls with a
    static weight, call prepare_poincare_linear once and reuse the result."""
    prep = prepare_poincare_linear(
        weight, bias, curvature, matmul_dtype=matmul_dtype,
        block_b=block_b, block_k=block_k, weight_resident=weight_resident)
    return poincare_linear_prepared(x, prep, approx_reciprocal=approx_reciprocal)


def _reference(x, weight, bias, c):
    """Pure-JAX reference of the same forward (for sanity check)."""
    sqrt_c = math.sqrt(c)
    x_norm = jnp.maximum(jnp.linalg.norm(x, axis=-1, keepdims=True), MIN_NORM)
    mx = x @ weight.T
    mx_norm = jnp.maximum(jnp.linalg.norm(mx, axis=-1, keepdims=True), MIN_NORM)
    res_c = jnp.tanh(mx_norm / x_norm * _artanh(sqrt_c * x_norm)) * mx / (
        mx_norm * sqrt_c)
    res = jnp.where(jnp.all(mx == 0.0, axis=-1, keepdims=True), 0.0, res_c)
    b_norm = jnp.maximum(jnp.linalg.norm(bias), MIN_NORM)
    p_bias = (jnp.tanh(sqrt_c * b_norm) * bias / (sqrt_c * b_norm))[None, :]
    x2 = jnp.sum(res * res, -1, keepdims=True)
    y2 = jnp.sum(p_bias * p_bias, -1, keepdims=True)
    xy = jnp.sum(res * p_bias, -1, keepdims=True)
    num = (1 + 2 * c * xy + c * y2) * res + (1 - c * x2) * p_bias
    denom = jnp.maximum(1 + 2 * c * xy + c * c * x2 * y2, MIN_NORM)
    return num / denom


if __name__ == "__main__":
    curvature = 1.0

    # --- small demo shapes (f32 path, weight auto-resident in VMEM) ---
    in_features, out_features, batch = 32, 32, 16
    key = jax.random.PRNGKey(0)
    kx, kw, kb = jax.random.split(key, 3)

    # xavier_uniform_(weight, gain=sqrt(2)): U(-a, a), a = sqrt(12/(fi+fo))
    bound = math.sqrt(12.0 / (in_features + out_features))
    weight = jax.random.uniform(
        kw, (out_features, in_features), jnp.float32, -bound, bound)
    # reset_parameters sets bias = 0; use a small nonzero bias so the
    # mobius_add path is actually exercised (semantics identical).
    bias = 0.05 * jax.random.normal(kb, (out_features,), jnp.float32)
    x = 0.1 * jax.random.normal(kx, (batch, in_features), jnp.float32)

    out = jax.block_until_ready(poincare_linear(x, weight, bias, curvature))
    ref = _reference(x, weight, bias, curvature)
    assert out.shape == (batch, out_features)
    assert jnp.allclose(out, ref, atol=2e-5, rtol=2e-5), "mismatch (f32 path)"

    # --- larger check: forced K-tiling, batch tiling, bf16 MXU path, and the
    #     cached prepare path (prepare once, run twice) ---
    in2, out2, batch2 = 256, 384, 72
    k2x, k2w, k2b = jax.random.split(jax.random.PRNGKey(1), 3)
    bound2 = math.sqrt(12.0 / (in2 + out2))
    weight2 = jax.random.uniform(k2w, (out2, in2), jnp.float32, -bound2, bound2)
    bias2 = 0.05 * jax.random.normal(k2b, (out2,), jnp.float32)
    x_big = 0.05 * jax.random.normal(k2x, (batch2, in2), jnp.float32)

    prep2 = prepare_poincare_linear(
        weight2, bias2, curvature, matmul_dtype=jnp.bfloat16,
        block_b=32, block_k=128, weight_resident=False)
    out_big = jax.block_until_ready(poincare_linear_prepared(x_big, prep2))
    out_big2 = jax.block_until_ready(poincare_linear_prepared(x_big, prep2))
    ref_big = _reference(x_big, weight2, bias2, curvature)
    assert out_big.shape == (batch2, out2)
    assert jnp.allclose(out_big, ref_big, atol=2e-2, rtol=2e-2), \
        "mismatch (bf16 path)"
    assert jnp.allclose(out_big, out_big2), "prepared-path reuse mismatch"

    print("KERNEL_OK")
</pallas_src>

<mosaic_0001>
module attributes {stable_mosaic.version = 11 : i64} {
  func.func @poincare_linear_kernel(%arg0: i32, %arg1: i32, %arg2: memref<8x128xf32, #tpu.memory_space<vmem>>, %arg3: memref<128x128xf32, #tpu.memory_space<vmem>>, %arg4: memref<1x128xf32, #tpu.memory_space<vmem>>, %arg5: memref<1x1xf32, #tpu.memory_space<vmem>>, %arg6: memref<8x128xf32, #tpu.memory_space<vmem>>, %arg7: memref<8x128xf32, #tpu.memory_space<vmem>>, %arg8: memref<8x1xf32, #tpu.memory_space<vmem>>) attributes {dimension_semantics = [#tpu.dimension_semantics<parallel>, #tpu.dimension_semantics<arbitrary>], iteration_bounds = array<i64: 2, 1>, scalar_prefetch = 0 : i64, scratch_operands = 2 : i64, tpu.core_type = #tpu.core_type<tc>, window_params = [{transform_indices = @transform_0, window_bounds = array<i64: 8, 128>}, {transform_indices = @transform_1, window_bounds = array<i64: 128, 128>}, {pipeline_mode = #tpu.pipeline_mode<synchronous>, transform_indices = @transform_2, window_bounds = array<i64: 1, 128>}, {pipeline_mode = #tpu.pipeline_mode<synchronous>, transform_indices = @transform_3, window_bounds = array<i64: 1, 1>}, {transform_indices = @transform_4, window_bounds = array<i64: 8, 128>}]} {
    %c0_i32 = arith.constant 0 : i32
    %0 = arith.cmpi eq, %arg1, %c0_i32 : i32
    %1 = arith.extui %0 : i1 to i32
    %c0_i32_0 = arith.constant 0 : i32
    %2 = arith.cmpi ne, %1, %c0_i32_0 : i32
    scf.if %2 {
      %cst_15 = arith.constant 0.000000e+00 : f32
      %18 = vector.broadcast %cst_15 : f32 to vector<8x128xf32>
      %c0_16 = arith.constant 0 : index
      %c0_17 = arith.constant 0 : index
      %19 = vector.load %arg7[%c0_16, %c0_17] : memref<8x128xf32, #tpu.memory_space<vmem>>, vector<8x128xf32>
      tpu.vector_store %arg7[%c0_16, %c0_17], %18 {strides = array<i32>} : memref<8x128xf32, #tpu.memory_space<vmem>>, vector<8x128xf32>,
      %cst_18 = arith.constant 0.000000e+00 : f32
      %20 = vector.broadcast %cst_18 : f32 to vector<8x1xf32>
      %c0_19 = arith.constant 0 : index
      %c0_20 = arith.constant 0 : index
      %21 = vector.load %arg8[%c0_19, %c0_20] : memref<8x1xf32, #tpu.memory_space<vmem>>, vector<8x1xf32>
      tpu.vector_store %arg8[%c0_19, %c0_20], %20 {strides = array<i32>} : memref<8x1xf32, #tpu.memory_space<vmem>>, vector<8x1xf32>,
    } else {
    }
    %c0 = arith.constant 0 : index
    %c0_1 = arith.constant 0 : index
    %3 = vector.load %arg2[%c0, %c0_1] : memref<8x128xf32, #tpu.memory_space<vmem>>, vector<8x128xf32>
    %c0_2 = arith.constant 0 : index
    %c0_3 = arith.constant 0 : index
    %4 = vector.load %arg8[%c0_2, %c0_3] : memref<8x1xf32, #tpu.memory_space<vmem>>, vector<8x1xf32>
    %5 = arith.mulf %3, %3 : vector<8x128xf32>
    %cst = arith.constant dense<0.000000e+00> : vector<8xf32>
    %6 = vector.multi_reduction <add>, %5, %cst [1] : vector<8x128xf32> to vector<8xf32>
    %7 = vector.shape_cast %6 : vector<8xf32> to vector<8x1xf32>
    %8 = arith.addf %4, %7 : vector<8x1xf32>
    %c0_4 = arith.constant 0 : index
    %c0_5 = arith.constant 0 : index
    %9 = vector.load %arg8[%c0_4, %c0_5] : memref<8x1xf32, #tpu.memory_space<vmem>>, vector<8x1xf32>
    tpu.vector_store %arg8[%c0_4, %c0_5], %8 {strides = array<i32>} : memref<8x1xf32, #tpu.memory_space<vmem>>, vector<8x1xf32>,
    %c0_6 = arith.constant 0 : index
    %c0_7 = arith.constant 0 : index
    %10 = vector.load %arg7[%c0_6, %c0_7] : memref<8x128xf32, #tpu.memory_space<vmem>>, vector<8x128xf32>
    %c0_8 = arith.constant 0 : index
    %c0_9 = arith.constant 0 : index
    %11 = vector.load %arg3[%c0_8, %c0_9] : memref<128x128xf32, #tpu.memory_space<vmem>>, vector<128x128xf32>
    %cst_10 = arith.constant dense<0.000000e+00> : vector<8x128xf32>
    %12 = tpu.matmul %3, %11, %cst_10 {dimension_numbers = #tpu.dot_dimension_numbers<[1], [0], [0], [1], [0, 0, 1, 1], [], []>} : vector<8x128xf32>, vector<128x128xf32>, vector<8x128xf32> -> vector<8x128xf32>
    %13 = arith.addf %10, %12 : vector<8x128xf32>
    %c0_11 = arith.constant 0 : index
    %c0_12 = arith.constant 0 : index
    %14 = vector.load %arg7[%c0_11, %c0_12] : memref<8x128xf32, #tpu.memory_space<vmem>>, vector<8x128xf32>
    tpu.vector_store %arg7[%c0_11, %c0_12], %13 {strides = array<i32>} : memref<8x128xf32, #tpu.memory_space<vmem>>, vector<8x128xf32>,
    %c0_i32_13 = arith.constant 0 : i32
    %15 = arith.cmpi eq, %arg1, %c0_i32_13 : i32
    %16 = arith.extui %15 : i1 to i32
    %c0_i32_14 = arith.constant 0 : i32
    %17 = arith.cmpi ne, %16, %c0_i32_14 : i32
    scf.if %17 {
      %c0_15 = arith.constant 0 : index
      %c0_16 = arith.constant 0 : index
      %18 = vector.load %arg7[%c0_15, %c0_16] : memref<8x128xf32, #tpu.memory_space<vmem>>, vector<8x128xf32>
      %19 = arith.mulf %18, %18 : vector<8x128xf32>
      %cst_17 = arith.constant dense<0.000000e+00> : vector<8xf32>
      %20 = vector.multi_reduction <add>, %19, %cst_17 [1] : vector<8x128xf32> to vector<8xf32>
      %21 = vector.shape_cast %20 : vector<8xf32> to vector<8x1xf32>
      %22 = math.sqrt %21 : vector<8x1xf32>
      %cst_18 = arith.constant 1.000000e-15 : f32
      %23 = vector.broadcast %cst_18 : f32 to vector<8x1xf32>
      %24 = arith.maximumf %22, %23 : vector<8x1xf32>
      %c0_19 = arith.constant 0 : index
      %c0_20 = arith.constant 0 : index
      %25 = vector.load %arg8[%c0_19, %c0_20] : memref<8x1xf32, #tpu.memory_space<vmem>>, vector<8x1xf32>
      %26 = math.sqrt %25 : vector<8x1xf32>
      %cst_21 = arith.constant 1.000000e-15 : f32
      %27 = vector.broadcast %cst_21 : f32 to vector<8x1xf32>
      %28 = arith.maximumf %26, %27 : vector<8x1xf32>
      %cst_22 = arith.constant 1.000000e+00 : f32
      %29 = vector.broadcast %cst_22 : f32 to vector<8x1xf32>
      %30 = arith.divf %29, %28 : vector<8x1xf32>
      %31 = arith.mulf %24, %30 : vector<8x1xf32>
      %cst_23 = arith.constant 1.000000e+00 : f32
      %32 = vector.broadcast %cst_23 : f32 to vector<8x1xf32>
      %33 = arith.mulf %32, %28 : vector<8x1xf32>
      %cst_24 = arith.constant -0.99999988 : f32
      %cst_25 = arith.constant 0.99999988 : f32
      %34 = vector.broadcast %cst_24 : f32 to vector<8x1xf32>
      %35 = arith.maximumf %34, %33 : vector<8x1xf32>
      %36 = vector.broadcast %cst_25 : f32 to vector<8x1xf32>
      %37 = arith.minimumf %36, %35 : vector<8x1xf32>
      %cst_26 = arith.constant 1.000000e+00 : f32
      %38 = vector.broadcast %cst_26 : f32 to vector<8x1xf32>
      %39 = arith.addf %38, %37 : vector<8x1xf32>
      %40 = math.log %39 : vector<8x1xf32>
      %cst_27 = arith.constant 1.000000e+00 : f32
      %41 = vector.broadcast %cst_27 : f32 to vector<8x1xf32>
      %42 = arith.subf %41, %37 : vector<8x1xf32>
      %43 = math.log %42 : vector<8x1xf32>
      %44 = arith.subf %40, %43 : vector<8x1xf32>
      %cst_28 = arith.constant 5.000000e-01 : f32
      %45 = vector.broadcast %cst_28 : f32 to vector<8x1xf32>
      %46 = arith.mulf %45, %44 : vector<8x1xf32>
      %47 = arith.mulf %31, %46 : vector<8x1xf32>
      %48 = math.tanh %47 : vector<8x1xf32>
      %cst_29 = arith.constant 1.000000e+00 : f32
      %49 = vector.broadcast %cst_29 : f32 to vector<8x1xf32>
      %50 = arith.mulf %24, %49 : vector<8x1xf32>
      %cst_30 = arith.constant 1.000000e+00 : f32
      %51 = vector.broadcast %cst_30 : f32 to vector<8x1xf32>
      %52 = arith.divf %51, %50 : vector<8x1xf32>
      %53 = arith.mulf %48, %52 : vector<8x1xf32>
      %54 = math.absf %18 : vector<8x128xf32>
      %cst_31 = arith.constant dense<0xFF800000> : vector<8xf32>
      %55 = vector.multi_reduction <maximumf>, %54, %cst_31 [1] : vector<8x128xf32> to vector<8xf32>
      %56 = vector.shape_cast %55 : vector<8xf32> to vector<8x1xf32>
      %cst_32 = arith.constant 0.000000e+00 : f32
      %57 = vector.broadcast %cst_32 : f32 to vector<8x1xf32>
      %58 = arith.cmpf oeq, %56, %57 : vector<8x1xf32>
      %cst_33 = arith.constant 0.000000e+00 : f32
      %59 = vector.broadcast %cst_33 : f32 to vector<8x1xf32>
      %60 = arith.select %58, %59, %53 : vector<8x1xi1>, vector<8x1xf32>
      %61 = vector.broadcast %60 : vector<8x1xf32> to vector<8x128xf32>
      %62 = arith.mulf %18, %61 : vector<8x128xf32>
      %c0_34 = arith.constant 0 : index
      %c0_35 = arith.constant 0 : index
      %63 = vector.load %arg4[%c0_34, %c0_35] : memref<1x128xf32, #tpu.memory_space<vmem>>, vector<1x128xf32>
      %c0_36 = arith.constant 0 : index
      %c0_37 = arith.constant 0 : index
      %64 = vector.load %arg5[%c0_36, %c0_37] : memref<1x1xf32, #tpu.memory_space<vmem>>, vector<1x1xf32>
      %65 = arith.mulf %62, %62 : vector<8x128xf32>
      %cst_38 = arith.constant dense<0.000000e+00> : vector<8xf32>
      %66 = vector.multi_reduction <add>, %65, %cst_38 [1] : vector<8x128xf32> to vector<8xf32>
      %67 = vector.shape_cast %66 : vector<8xf32> to vector<8x1xf32>
      %68 = vector.broadcast %63 : vector<1x128xf32> to vector<8x128xf32>
      %69 = arith.mulf %62, %68 : vector<8x128xf32>
      %cst_39 = arith.constant dense<0.000000e+00> : vector<8xf32>
      %70 = vector.multi_reduction <add>, %69, %cst_39 [1] : vector<8x128xf32> to vector<8xf32>
      %71 = vector.shape_cast %70 : vector<8xf32> to vector<8x1xf32>
      %cst_40 = arith.constant 2.000000e+00 : f32
      %72 = vector.broadcast %cst_40 : f32 to vector<8x1xf32>
      %73 = arith.mulf %72, %71 : vector<8x1xf32>
      %cst_41 = arith.constant 1.000000e+00 : f32
      %74 = vector.broadcast %cst_41 : f32 to vector<8x1xf32>
      %75 = arith.addf %74, %73 : vector<8x1xf32>
      %cst_42 = arith.constant 1.000000e+00 : f32
      %76 = vector.broadcast %cst_42 : f32 to vector<1x1xf32>
      %77 = arith.mulf %76, %64 : vector<1x1xf32>
      %78 = vector.broadcast %77 : vector<1x1xf32> to vector<8x1xf32>
      %79 = arith.addf %75, %78 : vector<8x1xf32>
      %80 = vector.broadcast %79 : vector<8x1xf32> to vector<8x128xf32>
      %81 = arith.mulf %80, %62 : vector<8x128xf32>
      %cst_43 = arith.constant 1.000000e+00 : f32
      %82 = vector.broadcast %cst_43 : f32 to vector<8x1xf32>
      %83 = arith.mulf %82, %67 : vector<8x1xf32>
      %cst_44 = arith.constant 1.000000e+00 : f32
      %84 = vector.broadcast %cst_44 : f32 to vector<8x1xf32>
      %85 = arith.subf %84, %83 : vector<8x1xf32>
      %86 = vector.broadcast %85 : vector<8x1xf32> to vector<8x128xf32>
      %87 = vector.broadcast %63 : vector<1x128xf32> to vector<8x128xf32>
      %88 = arith.mulf %86, %87 : vector<8x128xf32>
      %89 = arith.addf %81, %88 : vector<8x128xf32>
      %cst_45 = arith.constant 2.000000e+00 : f32
      %90 = vector.broadcast %cst_45 : f32 to vector<8x1xf32>
      %91 = arith.mulf %90, %71 : vector<8x1xf32>
      %cst_46 = arith.constant 1.000000e+00 : f32
      %92 = vector.broadcast %cst_46 : f32 to vector<8x1xf32>
      %93 = arith.addf %92, %91 : vector<8x1xf32>
      %cst_47 = arith.constant 1.000000e+00 : f32
      %94 = vector.broadcast %cst_47 : f32 to vector<8x1xf32>
      %95 = arith.mulf %94, %67 : vector<8x1xf32>
      %96 = vector.broadcast %64 : vector<1x1xf32> to vector<8x1xf32>
      %97 = arith.mulf %95, %96 : vector<8x1xf32>
      %98 = arith.addf %93, %97 : vector<8x1xf32>
      %cst_48 = arith.constant 1.000000e-15 : f32
      %99 = vector.broadcast %cst_48 : f32 to vector<8x1xf32>
      %100 = arith.maximumf %98, %99 : vector<8x1xf32>
      %cst_49 = arith.constant 1.000000e+00 : f32
      %101 = vector.broadcast %cst_49 : f32 to vector<8x1xf32>
      %102 = arith.divf %101, %100 : vector<8x1xf32>
      %103 = vector.broadcast %102 : vector<8x1xf32> to vector<8x128xf32>
      %104 = arith.mulf %89, %103 : vector<8x128xf32>
      %c0_50 = arith.constant 0 : index
      %c0_51 = arith.constant 0 : index
      %105 = vector.load %arg6[%c0_50, %c0_51] : memref<8x128xf32, #tpu.memory_space<vmem>>, vector<8x128xf32>
      tpu.vector_store %arg6[%c0_50, %c0_51], %104 {strides = array<i32>} : memref<8x128xf32, #tpu.memory_space<vmem>>, vector<8x128xf32>,
    } else {
    }
    return
  }
  func.func @transform_0(%arg0: i32, %arg1: i32) -> (i32, i32) {
    %c0_i32 = arith.constant 0 : i32
    return %arg0, %arg1 : i32, i32
  }
  func.func @transform_1(%arg0: i32, %arg1: i32) -> (i32, i32) {
    %c0_i32 = arith.constant 0 : i32
    %c0_i32_0 = arith.constant 0 : i32
    return %arg1, %c0_i32 : i32, i32
  }
  func.func @transform_2(%arg0: i32, %arg1: i32) -> (i32, i32) {
    %c0_i32 = arith.constant 0 : i32
    %c0_i32_0 = arith.constant 0 : i32
    %c0_i32_1 = arith.constant 0 : i32
    return %c0_i32, %c0_i32_0 : i32, i32
  }
  func.func @transform_3(%arg0: i32, %arg1: i32) -> (i32, i32) {
    %c0_i32 = arith.constant 0 : i32
    %c0_i32_0 = arith.constant 0 : i32
    %c0_i32_1 = arith.constant 0 : i32
    return %c0_i32, %c0_i32_0 : i32, i32
  }
  func.func @transform_4(%arg0: i32, %arg1: i32) -> (i32, i32) {
    %c0_i32 = arith.constant 0 : i32
    %c0_i32_0 = arith.constant 0 : i32
    return %arg0, %c0_i32 : i32, i32
  }
}

</mosaic_0001>

<bundles_post_ra>
// kernel: tpu_custom_call.1
= control target key start
LH: loop header
LB: loop body
LE: loop exit
PB: predicated region body
PF: predicated region fallthrough
CT: control target
= control target key end

     0   :  { %s1157_s0 = inlined_call_operand.hbm [shape: f32[16,128], index: 0, kind: input, shape index: {}]   ;;  %s1158_s1 = inlined_call_operand.hbm [shape: f32[128,128], index: 1, kind: input, shape index: {}]   ;;  %s1159_s2 = inlined_call_operand.vmem [shape: f32[1,128], index: 2, kind: input, shape index: {}]   ;;  %s1160_s3 = inlined_call_operand.<no memory space> [shape: f32[1,1], index: 3, kind: input, shape index: {}]   ;;  %s1161_s4 = inlined_call_operand.hbm [shape: f32[16,128], index: 4, kind: output, shape index: {}]  }
   0x1   :  { %v9_v0 = vstv %s1160_s3 }
   0x2   :  { %10 = vst [vmem:[#allocation4] sm:$0x1] %v9_v0 }
   0x3   :  { %11 = vsyncpa [#allocation6], 0 }
   0x4   :  { %13 = vsyncpa [#allocation6 + $0x1], 0 }
   0x5   :  { %14 = vsyncpa [#allocation9], 0 }
   0x6   :  { %15 = vsyncpa [#allocation7], 0 }
   0x7   :  { %17 = vsyncpa [#allocation7 + $0x1], 0  ;;  %s934_s17 = smov 0   ;;  %s936_s18 = smov 0  }
   0x8   :  { %s938_s19 = smov 0   ;;  %s940_s20 = smov 0  }
   0x9   :  { %s942_s21 = smov 0   ;;  %s944_s22 = smov 0  }
   0xa LB: > { %s560_s3 = sadd.s32 4294967295, %s895_s22   ;;  %s561_s23 = sadd.s32 4294967294, %s895_s22   ;;  %s895_s22 = sphi %s944_s22, %s23_s22   ;;  %s891_s21 = sphi %s942_s21, %s1185_s21   ;;  %s887_s20 = sphi %s940_s20, %s1184_s20   ;;  %s883_s19 = sphi %s938_s19, %s1183_s19   ;;  %s879_s18 = sphi %s936_s18, %s1182_s18   ;;  %s875_s17 = sphi %s934_s17, %s1181_s17  }
   0xb   : > { %p57_p0 = scmp.ne.s32.totalorder %s879_s18, %s875_s17  ;;  %p968_p1 = scmp.eq.s32.totalorder %s560_s3, 0 }
   0xc   : > { %p972_p2 = scmp.eq.s32.totalorder %s560_s3, 1  ;;  %p155_p3 = scmp.eq.s32.totalorder %s561_s23, 1 }
   0xd   : > { %s1166_s24 = scalar_select %p968_p1, 1, 0 }
   0xe   : > { %s1167_s25 = scalar_select %p972_p2, 1, 0 }
   0xf   : > { %p978_p4 = por %p968_p1, %p57_p0  ;;  %p562_p5 = scmp.ge.s32.totalorder %s895_s22, 1 }
  0x10   : > { %p983_p6 = por %p155_p3, %p57_p0  ;;  %p162_p7 = scmp.lt.s32.totalorder %s895_s22, 3 }
  0x11   : > { %s1168_s26 = scalar_select %p978_p4, 1, 0 }
  0x12   : > { %s1169_s27 = scalar_select %p983_p6, 1, 0 }
  0x13   : > { %p988_p8 = pnand %p562_p5, %p162_p7  ;;  %s897_s29 = smov [#allocation8]  }
  0x14   : > { %s177_s30 = sshll.u32 %s897_s29, 4  ;;  %s35_s6 = sadd.s32 1, %s891_s21  ;;  %s178_s30 = int_to_ptr.vmem [resolvable:$true] %s177_s30 }
  0x15   : > { %s1170_s28 = scalar_select %p988_p8, 1, 0 }
  0x16   : > { %p662_p9 = pneg %p988_p8  ;;  %s751_s9 = scalar_lea.hbm %s1158_s1, 2048 }
  0x17   : > { %p752_p12 = scmp.ne.s32.totalorder %s1158_s1, %s751_s9  ;;  %p758_p5 = scmp.lt.u32.totalorder %s751_s9, %s1158_s1 }
  0x18   : > { %p997_p11 = pnand %p662_p9, %p968_p1 }
  0x1a   : > { %p753_p13 = pneg %p997_p11 }
  0x1c   : > { %p754_p0 = pnand %p753_p13, %p752_p12 }
  0x1e   : > { %p755_p3 = pneg %p754_p0 }
  0x20   : > { %p760_p7 = pnand %p758_p5, %p755_p3 }
  0x22   : > { %763 = shalt.err (!%p760_p7)
}
  0x23   : > { %s764_s14 = scalar_lea.vmem %s178_s30, 2048  ;;  %p772_p1 = scmp.lt.s32.totalorder %s178_s30, %s178_s30 }
  0x24   : > { %p765_p9 = scmp.ne.s32.totalorder %s178_s30, %s764_s14  ;;  %p773_p4 = scmp.lt.s32.totalorder %s764_s14, %s764_s14 }
  0x26   : > { %p767_p10 = pnand %p765_p9, %p753_p13  ;;  %p774_p8 = por %p773_p4, %p772_p1 }
  0x28   : > { %p768_p6 = pneg %p767_p10 }
  0x2a   : > { %p775_p2 = pnand %p774_p8, %p768_p6 }
  0x2c   : > { %778 = shalt.err (!%p775_p2)
}
  0x2d   : > { %s898_s15 = smov 128   ;;  %s899_s16 = smov 8  }
  0x2e   : > { %665 = dma.hbm_to_vmem [thread:$0]  (!%p997_p11), %s1158_s1, 2048, %s178_s30, [#allocation9], %s898_s15, %s898_s15, %s899_s16  }
  0x2f   : > { %p37_p1 = scmp.ge.s32.totalorder %s35_s6, 2  ;;  %s44_s29 = sadd.s32 1, %s883_s19 }
  0x30   : > { %p51_p2 = scmp.ne.s32.totalorder %s883_s19, %s879_s18  ;;  %p52_p4 = scmp.eq.s32.totalorder %s895_s22, 0 }
  0x31   : > { %s1187_s6 = smov (%p37_p1, %s35_s6), 0  ;;  %p1173_p8 = scmp.ne.s32.totalorder %s1167_s25, 0 }
  0x32   : > { %p1024_p6 = por %p52_p4, %p51_p2  ;;  %s39_s5 = ssub.s32 %s891_s21, %s1187_s6 }
  0x33   : > { %p1030_p10 = por %p1173_p8, %p51_p2  ;;  %p675_p12 = scmp.lt.s32.totalorder %s895_s22, 2 }
  0x34   : > { %p42_p11 = scmp.eq.s32.totalorder %s39_s5, 0  ;;  %s197_s30 = sand.u32 1, %s883_s19  }
  0x35   : > { %s565_s9 = sshll.u32 %s197_s30, 3  ;;  %s566_s11 = sshll.u32 %s891_s21, 7 }
  0x36   : > { %s1039_s10 = scalar_select %p42_p11, %s883_s19, %s44_s29  }
  0x37   : > { %s1045_s14 = scalar_lea.hbm %s1157_s0, %s566_s11  ;;  %s201_s25 = scalar_lea.vmem [#allocation5], %s565_s9 }
  0x38   : > { %s209_s15 = sshll.u32 %s201_s25, 4  ;;  %p1051_p13 = pnand %p675_p12, %p1024_p6  ;;  %s1047_s15 = int_to_ptr.vmem [resolvable:$true] %s209_s15 }
  0x39   : > { %s198_s3 = scalar_lea.sflag [#allocation6], %s197_s30  ;;  %s779_s23 = scalar_lea.hbm %s1045_s14, 128 }
  0x3a   : > { %p780_p0 = scmp.ne.s32.totalorder %s1045_s14, %s779_s23  ;;  %p781_p3 = pneg %p1051_p13 }
  0x3b   : > { %s784_s9 = scalar_lea.hbm %s1157_s0, 256  ;;  %p785_p9 = scmp.lt.u32.totalorder %s1045_s14, %s1157_s0 }
  0x3c   : > { %p782_p5 = pnand %p781_p3, %p780_p0  ;;  %p786_p1 = scmp.lt.u32.totalorder %s784_s9, %s779_s23 }
  0x3d   : > { %p788_p4 = scmp.lt.u32.totalorder %s779_s23, %s1045_s14 }
  0x3e   : > { %p783_p7 = pneg %p782_p5  ;;  %p787_p2 = por %p786_p1, %p785_p9 }
  0x40   : > { %p789_p6 = por %p788_p4, %p787_p2 }
  0x42   : > { %p790_p8 = pnand %p789_p6, %p783_p7 }
  0x44   : > { %793 = shalt.err (!%p790_p8)
}
  0x45   : > { %s794_s30 = scalar_lea.vmem %s1047_s15, 128  ;;  %s900_s12 = smov [#allocation5]  }
  0x46   : > { %p795_p12 = scmp.ne.s32.totalorder %s1047_s15, %s794_s30  ;;  %s799_s13 = sshll.u32 %s900_s12, 4  ;;  %s800_s13 = int_to_ptr.vmem [resolvable:$false] %s799_s13 }
  0x47   : > { %s801_s25 = scalar_lea.vmem %s800_s13, 256  ;;  %p802_p5 = scmp.lt.s32.totalorder %s1047_s15, %s800_s13 }
  0x48   : > { %p797_p11 = pnand %p795_p12, %p781_p3  ;;  %p803_p9 = scmp.lt.s32.totalorder %s801_s25, %s794_s30 }
  0x4a   : > { %p798_p0 = pneg %p797_p11  ;;  %p804_p1 = por %p803_p9, %p802_p5 }
  0x4c   : > { %p805_p2 = pnand %p804_p1, %p798_p0 }
  0x4e   : > { %808 = shalt.err (!%p805_p2)
}
  0x4f   : > { %669 = dma.hbm_to_vmem [thread:$0]  (!%p1051_p13), %s1045_s14, 128, %s1047_s15, %s198_s3  }
  0x50   : > { %p1176_p7 = scmp.ne.s32.totalorder %s1170_s28, 0 }
  0x51   : > { %s1083_s23 = sand.u32 (!%p1176_p7), 1, %s879_s18   ;;  %p1177_p3 = scmp.ne.s32.totalorder (!%p1176_p7), %s1168_s26, 0 }
  0x52   : > { %218 = sbr.rel (%p1176_p7) target bundleno = 958 (0x3be), region = 36  ;;  %s568_s29 = sshll.u32 (!%p1176_p7), %s1083_s23, 3 }
  0x53   : > { %s221_s5 = scalar_lea.sflag (!%p1176_p7), [#allocation6], %s1083_s23  ;;  %s224_s9 = scalar_lea.vmem (!%p1176_p7), [#allocation5], %s568_s29 }
  0x59   : > { %862 = dma.done.wait (%p1177_p3), %s221_s5, 128  }
  0x5a   : > { %864 = vsyncadd (%p1177_p3), %s221_s5, 4294967168  ;;  %p1178_p13 = scmp.ne.s32.totalorder %s1166_s24, 0 }
  0x5c   : > { %866 = dma.done.wait (%p1178_p13), [#allocation9], 2048  }
  0x5d   : > { %868 = vsyncadd (%p1178_p13), [#allocation9], 4294965248  ;;  %vm259_vm0 = vcmask 7168   ;;  %v901_v1 = vmov 0.0|0.0   ;;  %v902_v2 = vmov 0.0   ;;  %vm903_vm1 = vmmov 0  }
  0x5e   : > { %630 = vmatprep.subr.bf16.mxu0 %v901_v1  ;;  %260 = vst.msk [vmem:[#allocation3] sm:$0xff] %vm259_vm0, %v902_v2  ;;  %627 = vmatprep.mubr.msk.f32.mxu0 %vm903_vm1, %v902_v2  ;;  %v270_v3 = vld [vmem:[#allocation8] sm:$0xff]  ;;  %v271_v4 = vld [vmem:[#allocation8 + $0x8] sm:$0xff]  ;;  %v272_v5 = vld [vmem:[#allocation8 + $0x10] sm:$0xff]  ;;  %v904_v36 = vmov 0   ;;  %s575_s28 = sshll.u32 %s887_s20, 7 }
  0x5f   : > { %v631_v6 = vpack.c.bf16 %v271_v4, %v270_v3  ;;  %v273_v7 = vld [vmem:[#allocation8 + $0x18] sm:$0xff]  ;;  %v274_v9 = vld [vmem:[#allocation8 + $0x20] sm:$0xff]  ;;  %v275_v10 = vld [vmem:[#allocation8 + $0x28] sm:$0xff]  ;;  %733 = vset.pattern.permute.xlu1 %v904_v36  ;;  %734 = vset.pattern.permute.xlu0 %v904_v36  ;;  %s252_s14 = scalar_lea.vmem [#allocation10], %s568_s29  ;;  %s1108_s7 = scalar_lea.hbm %s1161_s4, %s575_s28 }
  0x60   : > { %v634_v8 = vpack.c.bf16 %v273_v7, %v272_v5  ;;  %v261_v11 = vld [vmem:[%s224_s9] sm:$0xff]  ;;  %v637_v13 = vpack.c.bf16 %v275_v10, %v274_v9  ;;  %v278_v17 = vld [vmem:[#allocation8 + $0x40] sm:$0xff]  ;;  %v279_v18 = vld [vmem:[#allocation8 + $0x48] sm:$0xff]  ;;  %s469_s15 = sshll.u32 %s252_s14, 4  ;;  %s456_s11 = scalar_lea.sflag [#allocation7], %s1083_s23  ;;  %s1110_s15 = int_to_ptr.vmem [resolvable:$true] %s469_s15 }
  0x61   : > { %632 = vmatpush3.bf16.msra.mxu0 %v631_v6  ;;  %v263_v12 = vmul.f32 %v261_v11, %v261_v11  ;;  %v276_v14 = vld [vmem:[#allocation8 + $0x30] sm:$0xff]  ;;  %v277_v15 = vld [vmem:[#allocation8 + $0x38] sm:$0xff]  ;;  %v643_v19 = vpack.c.bf16 %v279_v18, %v278_v17  ;;  %v282_v23 = vld [vmem:[#allocation8 + $0x60] sm:$0xff]  ;;  %s809_s30 = scalar_lea.vmem %s1110_s15, 128  ;;  %s905_s20 = smov [#allocation10]  }
  0x62   : > { %633 = vmatprep.subr.bf16.mxu0 %v901_v1  ;;  %v640_v16 = vpack.c.bf16 %v277_v15, %v276_v14  ;;  %v280_v20 = vld [vmem:[#allocation8 + $0x50] sm:$0xff]  ;;  %v281_v21 = vld [vmem:[#allocation8 + $0x58] sm:$0xff]  ;;  %v283_v24 = vld [vmem:[#allocation8 + $0x68] sm:$0xff]  ;;  %p810_p4 = scmp.ne.s32.totalorder %s1110_s15, %s809_s30  ;;  %s813_s12 = sshll.u32 %s905_s20, 4  ;;  %s814_s12 = int_to_ptr.vmem [resolvable:$false] %s813_s12 }
  0x63   : > { %264 = vadd.xlane.f32.xlu0 %v263_v12  ;;  %v646_v22 = vpack.c.bf16 %v281_v21, %v280_v20  ;;  %v649_v25 = vpack.c.bf16 %v283_v24, %v282_v23  ;;  %v284_v26 = vld [vmem:[#allocation8 + $0x70] sm:$0xff]  ;;  %v285_v27 = vld [vmem:[#allocation8 + $0x78] sm:$0xff]  ;;  %v572_v5 = vld [vmem:[%s1159_s2] ss:$0 sm:$0xff]  ;;  %s815_s13 = scalar_lea.vmem %s814_s12, 256  ;;  %p816_p12 = scmp.lt.s32.totalorder %s1110_s15, %s814_s12 }
  0x64   : > { %v652_v28 = vpack.c.bf16 %v285_v27, %v284_v26  ;;  %p811_p6 = pnand %p810_p4, %p1030_p10  ;;  %p817_p11 = scmp.lt.s32.totalorder %s815_s13, %s809_s30 }
  0x65   : > { %635 = vmatpush3.bf16.msra.mxu0 %v634_v8  ;;  %v262_v29 = vld [vmem:[#allocation3] sm:$0xff] }
  0x66   : > { %636 = vmatprep.subr.bf16.mxu0 %v901_v1  ;;  %p812_p8 = pneg %p811_p6  ;;  %p818_p0 = por %p817_p11, %p816_p12 }
  0x68   : > { %p819_p5 = pnand %p818_p0, %p812_p8 }
  0x69   : > { %638 = vmatpush3.bf16.msra.mxu0 %v637_v13 }
  0x6a   : > { %639 = vmatprep.subr.bf16.mxu0 %v901_v1 }
  0x6d   : > { %641 = vmatpush3.bf16.msra.mxu0 %v640_v16 }
  0x6e   : > { %642 = vmatprep.subr.bf16.mxu0 %v901_v1 }
  0x71   : > { %644 = vmatpush3.bf16.msra.mxu0 %v643_v19 }
  0x72   : > { %645 = vmatprep.subr.bf16.mxu0 %v901_v1 }
  0x75   : > { %647 = vmatpush3.bf16.msra.mxu0 %v646_v22 }
  0x76   : > { %648 = vmatprep.subr.bf16.mxu0 %v901_v1 }
  0x79   : > { %650 = vmatpush3.bf16.msra.mxu0 %v649_v25 }
  0x7a   : > { %651 = vmatprep.subr.bf16.mxu0 %v901_v1 }
  0x7d   : > { %653 = vmatpush3.bf16.msra.mxu0 %v652_v28 }
  0x80   : > { %628 = vmatmul.mubr.f32.vlgmr.msra.gmra.mrb[0].mxu0 %v261_v11  ;;  %v573_v11 = vld [vmem:[#allocation4] ss:$0 sm:$0xff] }
  0xf0   : > { %v265_v30 = vpop.xlane.xlu0 %264 }
  0xf1   : > { %v266_v31 = vadd.f32 %v265_v30, %v262_v29 }
  0xf3   : > { %268 = vst.msk [vmem:[#allocation3] sm:$0xff] %vm259_vm0, %v266_v31 }
  0xfa   : > { %v373_v37 = vld [vmem:[#allocation3] sm:$0xff] }
  0xfb   : > { %735 = vrsqrt.f32 %v373_v37  ;;  %vm376_vm2 = vcmp.eq.f32.partialorder %v373_v37, inf  ;;  %v379_v40 = vand.u32 2147483648, %v373_v37  ;;  %vm378_vm3 = vcmp.eq.f32.partialorder %v373_v37, 0.0 }
 0x105   : > { %v736_v38 = vpop.eup %735 }
 0x106   : > { %v375_v39 = vmul.f32 %v736_v38, %v373_v37 }
 0x108   : > { %v377_v41 = vsel %vm376_vm2, %v373_v37, %v375_v39 }
 0x109   : > { %v380_v42 = vsel %vm378_vm3, %v379_v40, %v377_v41 }
 0x10a   : > { %v381_v43 = vmax.f32 %v380_v42, 1e-15 }
 0x10c   : > { %v571_v44 = vclamps-f32 %v381_v43, 0.9999999 }
 0x10e   : > { %v387_v45 = vadd.f32 1.0, %v571_v44  ;;  %v390_v46 = vsub.f32 1.0, %v571_v44 }
 0x110   : > { %737 = vlog2.f32 %v387_v45 }
 0x111   : > { %739 = vlog2.f32 %v390_v46 }
 0x11a   : > { %v738_v48 = vpop.eup %737 }
 0x11b   : > { %v740_v49 = vpop.eup %739  ;;  %v389_v50 = vmul.f32 0.6931472, %v738_v48 }
 0x11c   : > { %v392_v51 = vmul.f32 0.6931472, %v740_v49 }
 0x11e   : > { %v393_v56 = vsub.f32 %v389_v50, %v392_v51 }
 0x120   : > { %v394_v61 = vmul.f32 0.5, %v393_v56 }
 0x153   : > { %v352_v32 = vpop.f32.mrb[0].mxu0 }
 0x154   : > { %v629_v33 = vpop.f32.mrb[1].mxu0  ;;  %v400_v34 = vand.u32 2147483647, %v352_v32  ;;  %v362_v35 = vmul.f32 %v352_v32, %v352_v32 }
 0x156   : > { %401 = vmax.xlane.f32.xlu1 %v400_v34  ;;  %363 = vadd.xlane.f32.xlu0 %v362_v35 }
 0x1e3   : > { %v364_v47 = vpop.xlane.xlu0 %363  ;;  %v402_v0 = vpop.xlane.xlu1 %401 }
 0x1e4   : > { %741 = vrsqrt.f32 %v364_v47  ;;  %vm367_vm4 = vcmp.eq.f32.partialorder %v364_v47, inf  ;;  %v370_v54 = vand.u32 2147483648, %v364_v47  ;;  %vm369_vm5 = vcmp.eq.f32.partialorder %v364_v47, 0.0 }
 0x1e5   : > { %743 = vrcp.f32 %v381_v43  ;;  %vm403_vm6 = vcmp.eq.f32.partialorder %v402_v0, 0.0 }
 0x1ee   : > { %v742_v52 = vpop.eup %741 }
 0x1ef   : > { %v366_v53 = vmul.f32 %v742_v52, %v364_v47  ;;  %v744_v59 = vpop.eup %743 }
 0x1f1   : > { %v368_v55 = vsel %vm367_vm4, %v364_v47, %v366_v53 }
 0x1f2   : > { %v371_v57 = vsel %vm369_vm5, %v370_v54, %v368_v55 }
 0x1f3   : > { %v372_v58 = vmax.f32 %v371_v57, 1e-15 }
 0x1f5   : > { %v384_v60 = vmul.f32 %v744_v59, %v372_v58  ;;  %745 = vrcp.f32 %v372_v58 }
 0x1f7   : > { %v395_v62 = vmul.f32 %v394_v61, %v384_v60 }
 0x1f9   : > { %747 = vtanh.f32 %v395_v62 }
 0x1ff   : > { %v746_v63 = vpop.eup %745 }
 0x203   : > { %v748_v1 = vpop.eup %747 }
 0x204   : > { %v399_v2 = vmul.f32 %v748_v1, %v746_v63 }
 0x206   : > { %v404_v3 = vsel %vm403_vm6, 0.0, %v399_v2 }
 0x207   : > { %407 = vperm.xlu1 %733, %v404_v3  }
 0x286   : > { %v408_v4 = vpop.permute.xlu1 %407 }
 0x287   : > { %v410_v6 = vmul.f32 %v408_v4, %v352_v32 }
 0x289   : > { %v422_v7 = vmul.f32 %v572_v5, %v410_v6  ;;  %v413_v8 = vmul.f32 %v410_v6, %v410_v6 }
 0x28b   : > { %423 = vadd.xlane.f32.xlu0 %v422_v7 }
 0x28f   : > { %414 = vadd.xlane.f32.xlu0 %v413_v8 }
 0x318   : > { %v424_v9 = vpop.xlane.xlu0 %423 }
 0x319   : > { %v425_v10 = vmul.f32 2.0, %v424_v9 }
 0x31b   : > { %v426_v12 = vadd.f32 1.0, %v425_v10 }
 0x31c   : > { %v415_v13 = vpop.xlane.xlu0 %414 }
 0x31d   : > { %v433_v14 = vadd.f32 %v573_v11, %v426_v12  ;;  %v443_v15 = vmul.f32 %v573_v11, %v415_v13  ;;  %v440_v20 = vsub.f32 1.0, %v415_v13 }
 0x31f   : > { %v444_v16 = vadd.f32 %v443_v15, %v426_v12  ;;  %436 = vperm.xlu0 %734, %v433_v14   ;;  %v441_v22 = vmul.f32 %v572_v5, %v440_v20 }
 0x321   : > { %v445_v17 = vmax.f32 %v444_v16, 1e-15 }
 0x323   : > { %749 = vrcp.f32 %v445_v17 }
 0x32d   : > { %v750_v18 = vpop.eup %749 }
 0x32e   : > { %450 = vperm.xlu1 %733, %v750_v18  }
 0x39e   : > { %v437_v19 = vpop.permute.xlu0 %436 }
 0x39f   : > { %v439_v21 = vmul.f32 %v437_v19, %v410_v6 }
 0x3a1   : > { %v442_v23 = vadd.f32 %v441_v22, %v439_v21 }
 0x3ad   : > { %v451_v24 = vpop.permute.xlu1 %450 }
 0x3ae   : > { %v453_v25 = vmul.f32 %v451_v24, %v442_v23 }
 0x3b0   : > { %454 = vst [vmem:[%s252_s14] sm:$0xff] %v453_v25 }
 0x3b1   : > { %822 = shalt.err (!%p819_p5)
}
 0x3b2   : > { %s823_s25 = scalar_lea.hbm %s1108_s7, 128  ;;  %s827_s5 = scalar_lea.hbm %s1161_s4, 256 }
 0x3b3   : > { %p824_p9 = scmp.ne.s32.totalorder %s1108_s7, %s823_s25  ;;  %p828_p7 = scmp.lt.u32.totalorder %s1108_s7, %s1161_s4 }
 0x3b4   : > { %p829_p3 = scmp.lt.u32.totalorder %s827_s5, %s823_s25  ;;  %p831_p4 = scmp.lt.u32.totalorder %s823_s25, %s1108_s7 }
 0x3b5   : > { %p825_p1 = pnand %p824_p9, %p1030_p10 }
 0x3b6   : > { %p830_p13 = por %p829_p3, %p828_p7 }
 0x3b7   : > { %p826_p2 = pneg %p825_p1 }
 0x3b8   : > { %p832_p6 = por %p831_p4, %p830_p13 }
 0x3ba   : > { %p833_p8 = pnand %p832_p6, %p826_p2 }
 0x3bc   : > { %836 = shalt.err (!%p833_p8)
}
 0x3bd   : > { %660 = dma.vmem_to_hbm [thread:$0]  (%p1030_p10), %s1110_s15, 128, %s1108_s7, %s456_s11  }
 0x3be PF: > { %s481_s26 = sand.u32 1, %s875_s17   ;;  %p1179_p12 = scmp.ne.s32.totalorder %s1169_s27, 0 }
 0x3bf   : > { %p1180_p11 = scmp.ge.s32.totalorder %s895_s22, 2  ;;  %s482_s28 = scalar_lea.sflag [#allocation7], %s481_s26 }
 0x3c1   : > { %p671_p0 = pnand %p1180_p11, %p1179_p12 }
 0x3c3   : > { %870 = dma.done.wait (!%p671_p0), %s482_s28, 128  }
 0x3c4   : > { %872 = vsyncadd (!%p671_p0), %s482_s28, 4294967168  ;;  %s23_s22 = sadd.s32 1, %s895_s22   ;;  %s1181_s17 = smov %s879_s18 }
 0x3c5   : > { %p20_p5 = scmp.ge.s32.totalorder %s23_s22, 4   ;;  %s1182_s18 = smov %s883_s19 }
 0x3c6   : > { %s1183_s19 = smov %s1039_s10  ;;  %s1184_s20 = smov %s891_s21 }
 0x3c7   : > { %s1185_s21 = smov %s1187_s6  ;;  %22 = sbr.rel (!%p20_p5) target bundleno = 10 (0xa), region = 94 }
 0x3ce   :  { %487 = vsyncpa [#allocation6], 1 }
 0x3cf   :  { %489 = vsyncpa [#allocation6 + $0x1], 1 }
 0x3d0   :  { %490 = vsyncpa [#allocation9], 1 }
 0x3d1   :  { %491 = vsyncpa [#allocation7], 1 }
 0x3d2   :  { %493 = vsyncpa [#allocation7 + $0x1], 1 }

</bundles_post_ra>
